<compile_context>
chip_gen: v5e
topology: v5e:2x2
jax: 0.10.0
libtpu: 0.0.40
codegen_flags: <defaults>
</compile_context>

<pallas_src>
import functools

import jax
import jax.numpy as jnp
from jax.experimental import pallas as pl
from jax.experimental.pallas import tpu as pltpu


def _poisson_backward_kernel(x_ref,                       # [1, TILE_N]
                             g_ref,                       # [K, TILE_N] Gumbel noise
                             w1t_ref, b1t_ref,            # [D, 1], [D, 1]
                             w2t_ref, b2t_ref,            # [D, D], [D, 1]
                             w3t_ref, b3t_ref,            # [K, D], [K, 1]
                             out_ref,                     # [2K, TILE_N]
                             *, inv_tau):
    x = x_ref[...]                                        # [1, TILE_N] f32

    # --- Layer 1: Linear(1, D). Contraction length is 1, so do it on the VPU
    # as a broadcast multiply instead of a (wasteful) MXU matmul.
    h = jnp.maximum(w1t_ref[...] * x + b1t_ref[...], 0.0)          # [D, TILE_N]
    # nn.Dropout(0.5): eval-mode -> identity

    # --- Layer 2: Linear(D, D) on the MXU, transposed: h2^T = W2^T @ h1^T
    h = jnp.dot(w2t_ref[...], h, preferred_element_type=jnp.float32) + b2t_ref[...]
    h = jnp.maximum(h, 0.0)                                          # [D, TILE_N]
    # nn.Dropout(0.5): eval-mode -> identity

    # --- Layer 3: Linear(D, K): h3^T = W3^T @ h2^T
    h = jnp.dot(w3t_ref[...], h, preferred_element_type=jnp.float32) + b3t_ref[...]
    # h: [K, TILE_N] -- K on sublanes, rows on lanes.

    # --- log_softmax over K (sublane axis 0) ---
    m = jnp.max(h, axis=0, keepdims=True)
    s = h - m
    denom = jnp.sum(jnp.exp(s), axis=0, keepdims=True)
    logits = s - jnp.log(denom)                                      # [K, TILE_N]

    # --- Sample_Categorical(tau): Gumbel-softmax sample (noise from host) ---
    y = (logits + g_ref[...]) * inv_tau
    ym = jnp.max(y, axis=0, keepdims=True)
    e = jnp.exp(y - ym)
    z = e / jnp.sum(e, axis=0, keepdims=True)                        # [K, TILE_N]

    k = logits.shape[0]
    out_ref[0:k, :] = logits
    out_ref[k:, :] = z


def poisson_backward(x, params, noise_key, tau, tile_n=1024):
    """x: [B, L, 1] float32 -> (logits [B, L, K], z [B, L, K])."""
    B, L, _ = x.shape
    N = B * L

    w1, b1 = params["w1"], params["b1"]   # [1, D], [1, D]   (stored [in, out])
    w2, b2 = params["w2"], params["b2"]   # [D, D], [1, D]
    w3, b3 = params["w3"], params["b3"]   # [D, K], [1, K]
    D = w1.shape[1]
    K = w3.shape[1]

    # Transposed (lane-dense) layouts: features on sublanes, rows on lanes.
    x_t = x.reshape(N, 1).astype(jnp.float32).T                    # [1, N]
    g_t = jax.random.gumbel(noise_key, (K, N), jnp.float32)        # [K, N]
    w1t = w1.T.astype(jnp.float32)                                 # [D, 1]
    b1t = b1.reshape(D, 1).astype(jnp.float32)
    w2t = w2.T.astype(jnp.float32)                                 # [D, D]
    b2t = b2.reshape(D, 1).astype(jnp.float32)
    w3t = w3.T.astype(jnp.float32)                                 # [K, D]
    b3t = b3.reshape(K, 1).astype(jnp.float32)

    # Tile the row axis.  tile_n = 1024 keeps the per-tile working set
    # (~ D * tile_n * 4 B plus a handful of [K, tile_n] streams, double
    # buffered) well under the scoped VMEM default on v5e (16 MiB),
    # v6e (32 MiB) and v7x (32/64 MiB).  Small N -> single full-array tile.
    tn = tile_n if N >= tile_n else N
    grid = (pl.cdiv(N, tn),)

    kernel = functools.partial(_poisson_backward_kernel, inv_tau=1.0 / float(tau))

    def const_spec(shape):
        return pl.BlockSpec(shape, lambda i: (0,) * len(shape))

    def row_spec(rows):
        return pl.BlockSpec((rows, tn), lambda i: (0, i))

    in_bytes = 4 * (N + K * N + D + D + D * D + D + K * D + K)
    out_bytes = 4 * (2 * K * N)
    cost = pl.CostEstimate(
        flops=2 * N * D * (D + K) + 12 * N * K,
        transcendentals=3 * N * K,
        bytes_accessed=in_bytes + out_bytes,
    )

    out = pl.pallas_call(
        kernel,
        grid=grid,
        in_specs=[
            row_spec(1),            # x_t
            row_spec(K),            # Gumbel noise
            const_spec((D, 1)),     # w1^T
            const_spec((D, 1)),     # b1^T
            const_spec((D, D)),     # w2^T
            const_spec((D, 1)),     # b2^T
            const_spec((K, D)),     # w3^T
            const_spec((K, 1)),     # b3^T
        ],
        out_specs=pl.BlockSpec((2 * K, tn), lambda i: (0, i)),
        out_shape=jax.ShapeDtypeStruct((2 * K, N), jnp.float32),
        compiler_params=pltpu.CompilerParams(
            dimension_semantics=("parallel",)),   # shards row tiles across TCs on v7x
        cost_estimate=cost,
    )(x_t, g_t, w1t, b1t, w2t, b2t, w3t, b3t)

    logits = out[:K, :].T.reshape(B, L, K)
    z = out[K:, :].T.reshape(B, L, K)
    return logits, z


def init_params(key, D, K):
    """Deterministic synthetic parameters (shapes follow nn.Linear in __init__)."""
    k1, k2, k3, k4, k5, k6 = jax.random.split(key, 6)
    w1 = jax.random.normal(k1, (1, D), jnp.float32) * (1.0 / jnp.sqrt(1.0))
    b1 = jax.random.normal(k2, (1, D), jnp.float32) * 0.1
    w2 = jax.random.normal(k3, (D, D), jnp.float32) * (1.0 / jnp.sqrt(D))
    b2 = jax.random.normal(k4, (1, D), jnp.float32) * 0.1
    w3 = jax.random.normal(k5, (D, K), jnp.float32) * (1.0 / jnp.sqrt(D))
    b3 = jax.random.normal(k6, (1, K), jnp.float32) * 0.1
    return dict(w1=w1, b1=b1, w2=w2, b2=b2, w3=w3, b3=b3)


def _reference(x, params, noise_key, tau):
    """Pure-JAX reference with the same Gumbel noise as the kernel."""
    B, L, _ = x.shape
    N = B * L
    K = params["w3"].shape[1]
    xf = x.reshape(N, 1).astype(jnp.float32)
    h = jnp.maximum(xf @ params["w1"] + params["b1"], 0.0)
    h = jnp.maximum(h @ params["w2"] + params["b2"], 0.0)
    h = h @ params["w3"] + params["b3"]
    logits = jax.nn.log_softmax(h, axis=-1)
    g = jax.random.gumbel(noise_key, (K, N), jnp.float32).T
    z = jax.nn.softmax((logits + g) / tau, axis=-1)
    return logits.reshape(B, L, K), z.reshape(B, L, K)


if __name__ == "__main__":
    B, L, D, K = 2, 8, 32, 8
    tau = 1.0

    key = jax.random.PRNGKey(0)
    kx, kp, kg = jax.random.split(key, 3)
    x = jax.random.uniform(kx, (B, L, 1), jnp.float32)   # [B, L, 1]
    params = init_params(kp, D, K)

    logits, z = poisson_backward(x, params, noise_key=kg, tau=tau)
    jax.block_until_ready((logits, z))

    assert logits.shape == (B, L, K) and z.shape == (B, L, K)
    # log_softmax rows sum to 1 in prob space; z rows are a softmax (sum to 1).
    assert jnp.allclose(jnp.sum(jnp.exp(logits), axis=-1), 1.0, atol=1e-4)
    assert jnp.allclose(jnp.sum(z, axis=-1), 1.0, atol=1e-4)

    logits_ref, z_ref = _reference(x, params, noise_key=kg, tau=tau)
    assert jnp.allclose(logits, logits_ref, atol=1e-4, rtol=1e-4)
    assert jnp.allclose(z, z_ref, atol=1e-4, rtol=1e-4)

    print("KERNEL_OK")
</pallas_src>

<mosaic_0001>
module attributes {stable_mosaic.version = 11 : i64} {
  func.func @_poisson_backward_kernel(%arg0: i32, %arg1: memref<1x16xf32, #tpu.memory_space<vmem>>, %arg2: memref<8x16xf32, #tpu.memory_space<vmem>>, %arg3: memref<32x1xf32, #tpu.memory_space<vmem>>, %arg4: memref<32x1xf32, #tpu.memory_space<vmem>>, %arg5: memref<32x32xf32, #tpu.memory_space<vmem>>, %arg6: memref<32x1xf32, #tpu.memory_space<vmem>>, %arg7: memref<8x32xf32, #tpu.memory_space<vmem>>, %arg8: memref<8x1xf32, #tpu.memory_space<vmem>>, %arg9: memref<16x16xf32, #tpu.memory_space<vmem>>) attributes {dimension_semantics = [#tpu.dimension_semantics<parallel>], iteration_bounds = array<i64: 1>, scalar_prefetch = 0 : i64, scratch_operands = 0 : i64, tpu.core_type = #tpu.core_type<tc>, window_params = [{transform_indices = @transform_0, window_bounds = array<i64: 1, 16>}, {transform_indices = @transform_1, window_bounds = array<i64: 8, 16>}, {pipeline_mode = #tpu.pipeline_mode<synchronous>, transform_indices = @transform_2, window_bounds = array<i64: 32, 1>}, {pipeline_mode = #tpu.pipeline_mode<synchronous>, transform_indices = @transform_3, window_bounds = array<i64: 32, 1>}, {pipeline_mode = #tpu.pipeline_mode<synchronous>, transform_indices = @transform_4, window_bounds = array<i64: 32, 32>}, {pipeline_mode = #tpu.pipeline_mode<synchronous>, transform_indices = @transform_5, window_bounds = array<i64: 32, 1>}, {pipeline_mode = #tpu.pipeline_mode<synchronous>, transform_indices = @transform_6, window_bounds = array<i64: 8, 32>}, {pipeline_mode = #tpu.pipeline_mode<synchronous>, transform_indices = @transform_7, window_bounds = array<i64: 8, 1>}, {transform_indices = @transform_8, window_bounds = array<i64: 16, 16>}]} {
    %c0 = arith.constant 0 : index
    %c0_0 = arith.constant 0 : index
    %0 = vector.load %arg1[%c0, %c0_0] : memref<1x16xf32, #tpu.memory_space<vmem>>, vector<1x16xf32>
    %c0_1 = arith.constant 0 : index
    %c0_2 = arith.constant 0 : index
    %1 = vector.load %arg3[%c0_1, %c0_2] : memref<32x1xf32, #tpu.memory_space<vmem>>, vector<32x1xf32>
    %2 = vector.broadcast %1 : vector<32x1xf32> to vector<32x16xf32>
    %3 = vector.broadcast %0 : vector<1x16xf32> to vector<32x16xf32>
    %4 = arith.mulf %2, %3 : vector<32x16xf32>
    %c0_3 = arith.constant 0 : index
    %c0_4 = arith.constant 0 : index
    %5 = vector.load %arg4[%c0_3, %c0_4] : memref<32x1xf32, #tpu.memory_space<vmem>>, vector<32x1xf32>
    %6 = vector.broadcast %5 : vector<32x1xf32> to vector<32x16xf32>
    %7 = arith.addf %4, %6 : vector<32x16xf32>
    %cst = arith.constant 0.000000e+00 : f32
    %8 = vector.broadcast %cst : f32 to vector<32x16xf32>
    %9 = arith.maximumf %7, %8 : vector<32x16xf32>
    %c0_5 = arith.constant 0 : index
    %c0_6 = arith.constant 0 : index
    %10 = vector.load %arg5[%c0_5, %c0_6] : memref<32x32xf32, #tpu.memory_space<vmem>>, vector<32x32xf32>
    %cst_7 = arith.constant dense<0.000000e+00> : vector<32x16xf32>
    %11 = tpu.matmul %10, %9, %cst_7 {dimension_numbers = #tpu.dot_dimension_numbers<[1], [0], [0], [1], [0, 0, 1, 1], [], []>} : vector<32x32xf32>, vector<32x16xf32>, vector<32x16xf32> -> vector<32x16xf32>
    %c0_8 = arith.constant 0 : index
    %c0_9 = arith.constant 0 : index
    %12 = vector.load %arg6[%c0_8, %c0_9] : memref<32x1xf32, #tpu.memory_space<vmem>>, vector<32x1xf32>
    %13 = vector.broadcast %12 : vector<32x1xf32> to vector<32x16xf32>
    %14 = arith.addf %11, %13 : vector<32x16xf32>
    %cst_10 = arith.constant 0.000000e+00 : f32
    %15 = vector.broadcast %cst_10 : f32 to vector<32x16xf32>
    %16 = arith.maximumf %14, %15 : vector<32x16xf32>
    %c0_11 = arith.constant 0 : index
    %c0_12 = arith.constant 0 : index
    %17 = vector.load %arg7[%c0_11, %c0_12] : memref<8x32xf32, #tpu.memory_space<vmem>>, vector<8x32xf32>
    %cst_13 = arith.constant dense<0.000000e+00> : vector<8x16xf32>
    %18 = tpu.matmul %17, %16, %cst_13 {dimension_numbers = #tpu.dot_dimension_numbers<[1], [0], [0], [1], [0, 0, 1, 1], [], []>} : vector<8x32xf32>, vector<32x16xf32>, vector<8x16xf32> -> vector<8x16xf32>
    %c0_14 = arith.constant 0 : index
    %c0_15 = arith.constant 0 : index
    %19 = vector.load %arg8[%c0_14, %c0_15] : memref<8x1xf32, #tpu.memory_space<vmem>>, vector<8x1xf32>
    %20 = vector.broadcast %19 : vector<8x1xf32> to vector<8x16xf32>
    %21 = arith.addf %18, %20 : vector<8x16xf32>
    %cst_16 = arith.constant dense<0xFF800000> : vector<16xf32>
    %22 = vector.multi_reduction <maximumf>, %21, %cst_16 [0] : vector<8x16xf32> to vector<16xf32>
    %23 = vector.shape_cast %22 : vector<16xf32> to vector<1x16xf32>
    %24 = vector.broadcast %23 : vector<1x16xf32> to vector<8x16xf32>
    %25 = arith.subf %21, %24 : vector<8x16xf32>
    %26 = math.exp %25 : vector<8x16xf32>
    %cst_17 = arith.constant dense<0.000000e+00> : vector<16xf32>
    %27 = vector.multi_reduction <add>, %26, %cst_17 [0] : vector<8x16xf32> to vector<16xf32>
    %28 = vector.shape_cast %27 : vector<16xf32> to vector<1x16xf32>
    %29 = math.log %28 : vector<1x16xf32>
    %30 = vector.broadcast %29 : vector<1x16xf32> to vector<8x16xf32>
    %31 = arith.subf %25, %30 : vector<8x16xf32>
    %c0_18 = arith.constant 0 : index
    %c0_19 = arith.constant 0 : index
    %32 = vector.load %arg2[%c0_18, %c0_19] : memref<8x16xf32, #tpu.memory_space<vmem>>, vector<8x16xf32>
    %33 = arith.addf %31, %32 : vector<8x16xf32>
    %cst_20 = arith.constant 1.000000e+00 : f32
    %34 = vector.broadcast %cst_20 : f32 to vector<8x16xf32>
    %35 = arith.mulf %33, %34 : vector<8x16xf32>
    %cst_21 = arith.constant dense<0xFF800000> : vector<16xf32>
    %36 = vector.multi_reduction <maximumf>, %35, %cst_21 [0] : vector<8x16xf32> to vector<16xf32>
    %37 = vector.shape_cast %36 : vector<16xf32> to vector<1x16xf32>
    %38 = vector.broadcast %37 : vector<1x16xf32> to vector<8x16xf32>
    %39 = arith.subf %35, %38 : vector<8x16xf32>
    %40 = math.exp %39 : vector<8x16xf32>
    %cst_22 = arith.constant dense<0.000000e+00> : vector<16xf32>
    %41 = vector.multi_reduction <add>, %40, %cst_22 [0] : vector<8x16xf32> to vector<16xf32>
    %42 = vector.shape_cast %41 : vector<16xf32> to vector<1x16xf32>
    %43 = vector.broadcast %42 : vector<1x16xf32> to vector<8x16xf32>
    %44 = arith.divf %40, %43 : vector<8x16xf32>
    %c0_23 = arith.constant 0 : index
    %c0_24 = arith.constant 0 : index
    %45 = vector.load %arg9[%c0_23, %c0_24] : memref<16x16xf32, #tpu.memory_space<vmem>>, vector<8x16xf32>
    tpu.vector_store %arg9[%c0_23, %c0_24], %31 {strides = array<i32>} : memref<16x16xf32, #tpu.memory_space<vmem>>, vector<8x16xf32>,
    %c8 = arith.constant 8 : index
    %c0_25 = arith.constant 0 : index
    %46 = vector.load %arg9[%c8, %c0_25] : memref<16x16xf32, #tpu.memory_space<vmem>>, vector<8x16xf32>
    tpu.vector_store %arg9[%c8, %c0_25], %44 {strides = array<i32>} : memref<16x16xf32, #tpu.memory_space<vmem>>, vector<8x16xf32>,
    return
  }
  func.func @transform_0(%arg0: i32) -> (i32, i32) {
    %c0_i32 = arith.constant 0 : i32
    %c0_i32_0 = arith.constant 0 : i32
    return %c0_i32, %arg0 : i32, i32
  }
  func.func @transform_1(%arg0: i32) -> (i32, i32) {
    %c0_i32 = arith.constant 0 : i32
    %c0_i32_0 = arith.constant 0 : i32
    return %c0_i32, %arg0 : i32, i32
  }
  func.func @transform_2(%arg0: i32) -> (i32, i32) {
    %c0_i32 = arith.constant 0 : i32
    %c0_i32_0 = arith.constant 0 : i32
    %c0_i32_1 = arith.constant 0 : i32
    return %c0_i32, %c0_i32_0 : i32, i32
  }
  func.func @transform_3(%arg0: i32) -> (i32, i32) {
    %c0_i32 = arith.constant 0 : i32
    %c0_i32_0 = arith.constant 0 : i32
    %c0_i32_1 = arith.constant 0 : i32
    return %c0_i32, %c0_i32_0 : i32, i32
  }
  func.func @transform_4(%arg0: i32) -> (i32, i32) {
    %c0_i32 = arith.constant 0 : i32
    %c0_i32_0 = arith.constant 0 : i32
    %c0_i32_1 = arith.constant 0 : i32
    return %c0_i32, %c0_i32_0 : i32, i32
  }
  func.func @transform_5(%arg0: i32) -> (i32, i32) {
    %c0_i32 = arith.constant 0 : i32
    %c0_i32_0 = arith.constant 0 : i32
    %c0_i32_1 = arith.constant 0 : i32
    return %c0_i32, %c0_i32_0 : i32, i32
  }
  func.func @transform_6(%arg0: i32) -> (i32, i32) {
    %c0_i32 = arith.constant 0 : i32
    %c0_i32_0 = arith.constant 0 : i32
    %c0_i32_1 = arith.constant 0 : i32
    return %c0_i32, %c0_i32_0 : i32, i32
  }
  func.func @transform_7(%arg0: i32) -> (i32, i32) {
    %c0_i32 = arith.constant 0 : i32
    %c0_i32_0 = arith.constant 0 : i32
    %c0_i32_1 = arith.constant 0 : i32
    return %c0_i32, %c0_i32_0 : i32, i32
  }
  func.func @transform_8(%arg0: i32) -> (i32, i32) {
    %c0_i32 = arith.constant 0 : i32
    %c0_i32_0 = arith.constant 0 : i32
    return %c0_i32, %arg0 : i32, i32
  }
}

</mosaic_0001>

<bundles_post_ra>
// kernel: tpu_custom_call.1
= control target key start
LH: loop header
LB: loop body
LE: loop exit
PB: predicated region body
PF: predicated region fallthrough
CT: control target
= control target key end

     0   :  { %v328_v2 = vmov 0   ;;  %s451_s0 = inlined_call_operand.vmem [shape: f32[1,16], index: 0, kind: input, shape index: {}]   ;;  %s452_s1 = inlined_call_operand.vmem [shape: f32[8,16], index: 1, kind: input, shape index: {}]   ;;  %s453_s2 = inlined_call_operand.vmem [shape: f32[32,1], index: 2, kind: input, shape index: {}]   ;;  %s454_s3 = inlined_call_operand.vmem [shape: f32[32,1], index: 3, kind: input, shape index: {}]   ;;  %s455_s4 = inlined_call_operand.vmem [shape: f32[32,32], index: 4, kind: input, shape index: {}]   ;;  %s456_s5 = inlined_call_operand.vmem [shape: f32[32,1], index: 5, kind: input, shape index: {}]   ;;  %s457_s6 = inlined_call_operand.vmem [shape: f32[8,32], index: 6, kind: input, shape index: {}]   ;;  %s458_s7 = inlined_call_operand.vmem [shape: f32[8,1], index: 7, kind: input, shape index: {}]   ;;  %s459_s8 = inlined_call_operand.hbm [shape: f32[16,16], index: 8, kind: output, shape index: {}]  }
   0x1   :  { %v65_v0 = vld [vmem:[%s454_s3 + $0x18] sm:$0xff]  ;;  %291 = vset.pattern.permute.xlu1 %v328_v2  ;;  %290 = vset.pattern.permute.xlu0 %v328_v2  ;;  %v64_v3 = vld [vmem:[%s454_s3 + $0x10] sm:$0xff] }
   0x2   :  { %v34_v1 = vld [vmem:[%s453_s2 + $0x18] sm:$0xff]  ;;  %83 = vperm.xlu1 %291, %v65_v0   ;;  %292 = vset.pattern.permute.xlu2 %v328_v2 }
   0x3   :  { %52 = vperm.xlu0 %290, %v34_v1   ;;  %78 = vperm.xlu2 %292, %v64_v3  }
   0x4   :  { %13 = vsyncpa [#allocation3], 0  ;;  %v33_v4 = vld [vmem:[%s453_s2 + $0x10] sm:$0xff]  ;;  %v32_v5 = vld [vmem:[%s453_s2 + $0x8] sm:$0xff]  ;;  %vm122_vm0 = vcmask 261120   ;;  %vm198_vm1 = vcmask 130048  }
   0x5   :  { %v31_v6 = vld [vmem:[%s453_s2] sm:$0xff]  ;;  %v63_v7 = vld [vmem:[%s454_s3 + $0x8] sm:$0xff]  ;;  %v101_v9 = vld [vmem:[%s456_s5 + $0x18] sm:$0xff]  ;;  %s261_s19 = sshll.u32 %s459_s8, 4  ;;  %s330_s20 = smov 128   ;;  %s262_s19 = int_to_ptr.hbm [resolvable:$true] %s261_s19 }
   0x6   :  { %v62_v8 = vld [vmem:[%s454_s3] sm:$0xff]  ;;  %v100_v10 = vld [vmem:[%s456_s5 + $0x10] sm:$0xff]  ;;  %v99_v11 = vld [vmem:[%s456_s5 + $0x8] sm:$0xff]  ;;  %s331_s21 = smov 8  }
   0x7   :  { %v98_v12 = vld [vmem:[%s456_s5] sm:$0xff]  ;;  %v95_v36 = vld [vmem:[%s455_s4 + $0x8] sm:$0xff]  ;;  %v96_v37 = vld [vmem:[%s455_s4 + $0x10] sm:$0xff] }
   0x8   :  { %v169_v13 = vld [vmem:[%s458_s7] sm:$0xff]  ;;  %v97_v38 = vld [vmem:[%s455_s4 + $0x18] sm:$0xff] }
   0x9   :  { %v293_v14 = vld [vmem:[%s451_s0] ss:$0 sm:$0xff] }
   0xa   :  { %42 = vperm.xlu1 %291, %v32_v5   ;;  %v94_v35 = vld [vmem:[%s455_s4] sm:$0xff] }
   0xb   :  { %47 = vperm.xlu0 %290, %v33_v4   ;;  %37 = vperm.xlu2 %292, %v31_v6   ;;  %v168_v55 = vld [vmem:[%s457_s6] sm:$0xff] }
  0x12   :  { %68 = vperm.xlu1 %291, %v62_v8  }
  0x13   :  { %73 = vperm.xlu0 %290, %v63_v7   ;;  %119 = vperm.xlu2 %292, %v101_v9  }
  0x1a   :  { %109 = vperm.xlu1 %291, %v99_v11  }
  0x1b   :  { %114 = vperm.xlu0 %290, %v100_v10   ;;  %104 = vperm.xlu2 %292, %v98_v12  }
  0x23   :  { %172 = vperm.xlu0 %290, %v169_v13  }
  0x5d   :  { %v79_v19 = vpop.permute.xlu2 %78 }
  0x65   :  { %v38_v26 = vpop.permute.xlu2 %37 }
  0x66   :  { %v58_v27 = vmul.f32 %v293_v14, %v38_v26 }
  0x6d   :  { %v120_v40 = vpop.permute.xlu2 %119 }
  0x74   :  { %v84_v15 = vpop.permute.xlu1 %83 }
  0x75   :  { %v53_v16 = vpop.permute.xlu0 %52  ;;  %v105_v50 = vpop.permute.xlu2 %104 }
  0x76   :  { %v61_v17 = vmul.f32 %v293_v14, %v53_v16 }
  0x78   :  { %v89_v18 = vadd.f32 %v84_v15, %v61_v17 }
  0x7a   :  { %v93_v20 = vmax.f32 %v89_v18, 0.0 }
  0x7c   :  { %147 = vmatpush.msra.mxu0 %v93_v20  ;;  %278 = vmatpush.msra.mxu2 %v93_v20  ;;  %v43_v22 = vpop.permute.xlu1 %42 }
  0x7d   :  { %279 = vmatpush.msra.mxu3 %v93_v20  ;;  %v48_v21 = vpop.permute.xlu0 %47  ;;  %v59_v28 = vmul.f32 %v293_v14, %v43_v22 }
  0x7e   :  { %v60_v23 = vmul.f32 %v293_v14, %v48_v21  ;;  %v219_v14 = vld [vmem:[%s452_s1] sm:$0xff]  ;;  %s329_s1 = smov [#allocation2]  }
  0x7f   :  { %s259_s16 = sshll.u32 %s329_s1, 4  ;;  %s260_s16 = int_to_ptr.vmem [resolvable:$true] %s259_s16 }
  0x80   :  { %v88_v24 = vadd.f32 %v79_v19, %v60_v23 }
  0x82   :  { %v92_v25 = vmax.f32 %v88_v24, 0.0 }
  0x84   :  { %148 = vmatpush.msra.mxu0 %v92_v25  ;;  %280 = vmatpush.msra.mxu2 %v92_v25  ;;  %v69_v30 = vpop.permute.xlu1 %68 }
  0x85   :  { %281 = vmatpush.msra.mxu3 %v92_v25  ;;  %v74_v29 = vpop.permute.xlu0 %73  ;;  %v86_v32 = vadd.f32 %v69_v30, %v58_v27 }
  0x86   :  { %v87_v31 = vadd.f32 %v74_v29, %v59_v28 }
  0x87   :  { %v90_v34 = vmax.f32 %v86_v32, 0.0 }
  0x88   :  { %v91_v33 = vmax.f32 %v87_v31, 0.0 }
  0x8a   :  { %149 = vmatpush.msra.mxu0 %v91_v33  ;;  %282 = vmatpush.msra.mxu2 %v91_v33 }
  0x8b   :  { %283 = vmatpush.msra.mxu3 %v91_v33 }
  0x8c   :  { %150 = vmatpush.msra.mxu0 %v90_v34  ;;  %284 = vmatpush.msra.mxu2 %v90_v34  ;;  %v110_v46 = vpop.permute.xlu1 %109 }
  0x8d   :  { %285 = vmatpush.msra.mxu3 %v90_v34  ;;  %273 = vmatmul.msk.f32.vlgmr.msra.gmra.mxu0 %vm122_vm0, %v94_v35  ;;  %v115_v41 = vpop.permute.xlu0 %114 }
  0x8e   :  { %274 = vmatmul.msk.f32.vlgmr.msra.gmra.mxu2 %vm122_vm0, %v95_v36  ;;  %275 = vmatmul.msk.f32.vlgmr.msra.gmra.mxu3 %vm122_vm0, %v96_v37 }
  0x95   :  { %v173_v56 = vpop.permute.xlu0 %172 }
  0x96   :  { %276 = vmatmul.msk.f32.gmra.mxu3 %vm122_vm0, %v97_v38 }
 0x10a   :  { %v152_v47 = vpop.f32.mrf.mxu0 }
 0x10b   :  { %v153_v51 = vadd.f32 %v152_v47, %v105_v50 }
 0x10d   :  { %v164_v54 = vmax.f32 %v153_v51, 0.0 }
 0x111   :  { %v158_v39 = vpop.f32.mrf.mxu3  ;;  %v155_v42 = vpop.f32.mrf.mxu2 }
 0x112   :  { %v159_v44 = vadd.f32 %v158_v39, %v115_v41  ;;  %v156_v48 = vadd.f32 %v155_v42, %v110_v46 }
 0x114   :  { %v166_v52 = vmax.f32 %v159_v44, 0.0  ;;  %v165_v53 = vmax.f32 %v156_v48, 0.0 }
 0x119   :  { %v161_v43 = vpop.f32.mrf.mxu3 }
 0x11a   :  { %v162_v45 = vadd.f32 %v161_v43, %v120_v40 }
 0x11c   :  { %v167_v49 = vmax.f32 %v162_v45, 0.0 }
 0x11e   :  { %190 = vmatpush.msra.mxu1 %v167_v49 }
 0x120   :  { %191 = vmatpush.msra.mxu1 %v166_v52 }
 0x122   :  { %192 = vmatpush.msra.mxu1 %v165_v53 }
 0x124   :  { %193 = vmatpush.msra.mxu1 %v164_v54 }
 0x125   :  { %277 = vmatmul.msk.f32.vlgmr.msra.gmra.mxu1 %vm122_vm0, %v168_v55 }
 0x1a2   :  { %v195_v57 = vpop.f32.mrf.mxu1 }
 0x1a3   :  { %v196_v58 = vadd.f32 %v195_v57, %v173_v56 }
 0x1a5   :  { %v199_v59 = vsel %vm198_vm1, %v196_v58, -inf }
 0x1a6   :  { %v200_v60 = vrot.slane %v199_v59, 4 }
 0x1a8   :  { %v201_v61 = vmax.f32 %v199_v59, %v200_v60 }
 0x1aa   :  { %v202_v62 = vrot.slane %v201_v61, 2 }
 0x1ac   :  { %v203_v63 = vmax.f32 %v201_v61, %v202_v62 }
 0x1ae   :  { %v204_v0 = vrot.slane %v203_v63, 1 }
 0x1b0   :  { %v205_v1 = vmax.f32 %v203_v63, %v204_v0 }
 0x1b2   :  { %v206_v2 = vsub.f32 %v196_v58, %v205_v1 }
 0x1b4   :  { %v207_v3 = vmul.f32 1.442695, %v206_v2 }
 0x1b6   :  { %294 = vpow2.f32 %v207_v3 }
 0x1bc   :  { %v295_v4 = vpop.eup %294 }
 0x1bd   :  { %v209_v5 = vsel %vm198_vm1, %v295_v4, 0.0 }
 0x1be   :  { %v210_v6 = vrot.slane %v209_v5, 4 }
 0x1c0   :  { %v211_v7 = vadd.f32 %v210_v6, %v209_v5 }
 0x1c2   :  { %v212_v8 = vrot.slane %v211_v7, 2 }
 0x1c4   :  { %v213_v9 = vadd.f32 %v212_v8, %v211_v7 }
 0x1c6   :  { %v214_v10 = vrot.slane %v213_v9, 1 }
 0x1c8   :  { %v215_v11 = vadd.f32 %v214_v10, %v213_v9 }
 0x1ca   :  { %296 = vlog2.f32 %v215_v11 }
 0x1d0   :  { %v297_v12 = vpop.eup %296 }
 0x1d1   :  { %v217_v13 = vmul.f32 0.6931472, %v297_v12 }
 0x1d3   :  { %v218_v15 = vsub.f32 %v206_v2, %v217_v13 }
 0x1d5   :  { %v220_v16 = vadd.f32 %v219_v14, %v218_v15  ;;  %253 = vst.msk [vmem:[#allocation2] sm:$0xff] %vm198_vm1, %v218_v15 }
 0x1d7   :  { %v221_v17 = vsel %vm198_vm1, %v220_v16, -inf }
 0x1d8   :  { %v222_v18 = vrot.slane %v221_v17, 4 }
 0x1da   :  { %v223_v19 = vmax.f32 %v221_v17, %v222_v18 }
 0x1dc   :  { %v224_v20 = vrot.slane %v223_v19, 2 }
 0x1de   :  { %v225_v21 = vmax.f32 %v223_v19, %v224_v20 }
 0x1e0   :  { %v226_v22 = vrot.slane %v225_v21, 1 }
 0x1e2   :  { %v227_v23 = vmax.f32 %v225_v21, %v226_v22 }
 0x1e4   :  { %v228_v24 = vsub.f32 %v220_v16, %v227_v23 }
 0x1e6   :  { %v229_v25 = vmul.f32 1.442695, %v228_v24 }
 0x1e8   :  { %298 = vpow2.f32 %v229_v25 }
 0x1ee   :  { %v299_v26 = vpop.eup %298 }
 0x1ef   :  { %v231_v27 = vsel %vm198_vm1, %v299_v26, 0.0 }
 0x1f0   :  { %v232_v28 = vrot.slane %v231_v27, 4 }
 0x1f2   :  { %v233_v29 = vadd.f32 %v232_v28, %v231_v27 }
 0x1f4   :  { %v234_v30 = vrot.slane %v233_v29, 2 }
 0x1f6   :  { %v235_v31 = vadd.f32 %v234_v30, %v233_v29 }
 0x1f8   :  { %v236_v32 = vrot.slane %v235_v31, 1 }
 0x1fa   :  { %v237_v33 = vadd.f32 %v236_v32, %v235_v31 }
 0x1fc   :  { %300 = vrcp.f32 %v237_v33  ;;  %v249_v37 = vand.u32 2147483648, %v237_v33  ;;  %v247_v39 = vand.u32 2147483647, %v237_v33  ;;  %vm243_vm3 = vweird.f32 %v237_v33 }
 0x1fe   :  { %v250_v41 = vor.u32 1.1754944e-38, %v249_v37  ;;  %vm248_vm5 = vcmp.eq.f32.partialorder %v247_v39, 8.507059e+37 }
 0x202   :  { %v301_v34 = vpop.eup %300 }
 0x203   :  { %v239_v35 = vmul.f32 %v301_v34, %v237_v33  ;;  %vm244_vm2 = vweird.f32 %v301_v34 }
 0x204   :  { %vm245_vm4 = vmor %vm243_vm3, %vm244_vm2 }
 0x205   :  { %v240_v36 = vsub.f32 1.0, %v239_v35 }
 0x207   :  { %v241_v38 = vmul.f32 %v301_v34, %v240_v36 }
 0x209   :  { %v242_v40 = vadd.f32 %v301_v34, %v241_v38 }
 0x20b   :  { %v246_v42 = vsel %vm245_vm4, %v301_v34, %v242_v40 }
 0x20c   :  { %v251_v43 = vsel %vm248_vm5, %v250_v41, %v246_v42 }
 0x20d   :  { %v252_v44 = vmul.f32 %v299_v26, %v251_v43 }
 0x20f   :  { %254 = vst.msk [vmem:[#allocation2 + $0x8] sm:$0xff] %vm198_vm1, %v252_v44 }
 0x210   :  { %267 = dma.vmem_to_hbm [thread:$0]  %s260_s16, 256, %s262_s19, [#allocation3], %s330_s20, %s330_s20, %s331_s21  }
 0x211   :  { %326 = dma.done.wait [#allocation3], 256  }
 0x212   :  { %327 = vsyncadd [#allocation3], 4294967040 }
 0x213   :  { %272 = vsyncpa [#allocation3], 1 }

</bundles_post_ra>
